<compile_context>
chip_gen: v6e
topology: v6e:2x2x1
jax: 0.10.0
libtpu: 0.0.40
codegen_flags: <defaults>
</compile_context>

<pallas_src>
import functools

import jax
import jax.numpy as jnp
import numpy as np
from jax.experimental import pallas as pl
from jax.experimental.pallas import tpu as pltpu

_MIB = 1024 * 1024


def _gsp_kernel(x_ref, *refs, fused):
    # x_ref: (TB, N, C) io-dtype; weights bf16; temp/bias rows f32; o_ref io-dtype
    TB, N, C = x_ref.shape
    if fused:
        wqkv_ref, temp_ref, wproj_ref, bproj_ref, o_ref = refs
    else:
        wq_ref, wk_ref, wv_ref, temp_ref, wproj_ref, bproj_ref, o_ref = refs

    # ---- qkv projection on the MXU (bf16 operands, f32 accumulation) -------
    x2d = x_ref[...].reshape(TB * N, C).astype(jnp.bfloat16)
    if fused:
        # One (TB*N, C) x (C, 3C) matmul keeps the rhs staged 3x longer; the
        # q/k/v slices are lane aligned because C % 128 == 0.
        qkv = jnp.dot(x2d, wqkv_ref[...], preferred_element_type=jnp.float32)
        q = qkv[:, 0 * C:1 * C]
        k = qkv[:, 1 * C:2 * C]
        v = qkv[:, 2 * C:3 * C]
    else:
        q = jnp.dot(x2d, wq_ref[...], preferred_element_type=jnp.float32)
        k = jnp.dot(x2d, wk_ref[...], preferred_element_type=jnp.float32)
        v = jnp.dot(x2d, wv_ref[...], preferred_element_type=jnp.float32)
    q = q.reshape(TB, N, C)
    k = k.reshape(TB, N, C)
    v = v.reshape(TB, N, C)

    # ---- fused F.normalize(dim=-1) + temperature ----------------------------
    eps2 = 1e-24  # (1e-12)^2, matches PyTorch F.normalize eps clamp
    ssq_q = jnp.maximum(jnp.sum(q * q, axis=1, keepdims=True), eps2)   # (TB,1,C)
    ssq_k = jnp.maximum(jnp.sum(k * k, axis=1, keepdims=True), eps2)   # (TB,1,C)
    temp = temp_ref[...][None, :, :]                                   # (1,1,C)
    scale = temp * jax.lax.rsqrt(ssq_q) * jax.lax.rsqrt(ssq_k)         # (TB,1,C)

    # ---- softmax over N (axis=1) without a max reduction --------------------
    # After per-column L2 normalization |q_n * k_n| <= 1 elementwise, so
    # (q*k)*scale - |temperature| <= 0 and exp() cannot overflow.  Softmax is
    # shift invariant, so this is exact.  NOTE: relies on the normalization
    # above — keep these together.
    attn = (q * k) * scale - jnp.abs(temp)                             # (TB,N,C)
    e = jnp.exp(attn)
    denom = jnp.sum(e, axis=1, keepdims=True)                          # (TB,1,C)
    attn = e * pl.reciprocal(denom, approx=True)

    # attn_drop / proj_drop have p=0 -> identity.

    # ---- weighted values + output projection (MXU) + bias -------------------
    out = (attn * v).astype(jnp.bfloat16).reshape(TB * N, C)
    out = jnp.dot(out, wproj_ref[...], preferred_element_type=jnp.float32)
    out = out + bproj_ref[...]
    o_ref[...] = out.reshape(TB, N, C).astype(o_ref.dtype)


def _const_spec(shape):
    """BlockSpec for a grid-invariant (constant) input; single-buffered when
    the installed Pallas supports pipeline_mode=pl.Buffered(1)."""
    index_map = lambda b: (0,) * len(shape)
    try:
        return pl.BlockSpec(shape, index_map, pipeline_mode=pl.Buffered(1))
    except Exception:
        return pl.BlockSpec(shape, index_map)


def _tpu_vmem_and_cores():
    """Per-TensorCore VMEM capacity and TensorCores/chip (best effort)."""
    vmem_cap = 64 * _MIB  # conservative default = smallest per-core VMEM (v7x)
    try:
        vmem_cap = int(getattr(pltpu.get_tpu_info(), "vmem_capacity_bytes",
                               vmem_cap))
    except Exception:
        pass
    num_cores = 1
    try:
        if "v7" in jax.devices()[0].device_kind.lower():
            num_cores = 2
    except Exception:
        pass
    if vmem_cap <= 64 * _MIB:
        num_cores = max(num_cores, 2)  # v7x-sized VMEM -> 2 TCs per chip
    return vmem_cap, num_cores


def _choose_tb(B, N, C, *, io_bytes, budget_bytes, num_cores):
    """Largest batch-tile TB whose real VMEM footprint fits the budget."""
    # Per element of one (TB, N, C) slab:
    #   2 (in+out) x 2 (double-buffered pipeline) x io_bytes   BlockSpec buffers
    #   ~36 B of in-kernel f32/bf16 intermediates (q,k,v, attn, e, casts)
    per_elem = 2 * 2 * io_bytes + 36
    weight_bytes = 16 * C * C + 4 * 2 * C          # worst case (double buffered)
    slab = per_elem * N * C
    cap_mem = max(1, (budget_bytes - weight_bytes) // slab)
    # Keep >= num_cores grid steps only on multi-TC chips (v7x); on v5e/v6e a
    # single core means splitting only adds per-step overhead.
    cap_core = max(1, B // num_cores) if num_cores > 1 else B
    target_rows = 512 if num_cores > 1 else 1024   # MXU M target per grid step
    cap_rows = max(1, -(-target_rows // N))
    tb = int(max(1, min(B, cap_mem, cap_core, cap_rows)))
    while B % tb:                                  # keep the grid exact
        tb -= 1
    return max(tb, 1)


def global_semantic_path_forward(x, w_qkv, temperature, w_proj, b_proj,
                                 num_heads, *, io_dtype=None):
    """x: [B, N, C].  Returns [B, N, C] in io_dtype (default: x.dtype)."""
    B, N, C = x.shape
    d = C // num_heads
    io_dtype = np.dtype(x.dtype) if io_dtype is None else np.dtype(io_dtype)
    x_io = x.astype(io_dtype)

    # temperature [H,1,1] -> per-column row [1, C]  (column c = h*d + j)
    temp_row = jnp.repeat(temperature.reshape(num_heads), d).reshape(1, C)
    temp_row = temp_row.astype(jnp.float32)
    bproj_row = b_proj.reshape(1, C).astype(jnp.float32)
    wp = jnp.asarray(w_proj.T, dtype=jnp.bfloat16)

    fused = (C % 128 == 0)
    if fused:
        weight_args = (jnp.asarray(w_qkv.T, dtype=jnp.bfloat16),)       # (C, 3C)
        weight_specs = [_const_spec((C, 3 * C))]
    else:
        weight_args = (jnp.asarray(w_qkv[:C].T, dtype=jnp.bfloat16),
                       jnp.asarray(w_qkv[C:2 * C].T, dtype=jnp.bfloat16),
                       jnp.asarray(w_qkv[2 * C:].T, dtype=jnp.bfloat16))
        weight_specs = [_const_spec((C, C)) for _ in range(3)]

    vmem_cap, num_cores = _tpu_vmem_and_cores()
    budget = int(0.70 * vmem_cap)        # ~45 MiB on v7x, ~90 MiB on v5e/v6e
    TB = _choose_tb(B, N, C, io_bytes=io_dtype.itemsize,
                    budget_bytes=budget, num_cores=num_cores)
    grid = (B // TB,)

    cost = pl.CostEstimate(
        flops=8 * B * N * C * C,                       # qkv + proj matmuls
        transcendentals=B * N * C + 3 * B * C,         # exp + rsqrt/recip rows
        bytes_accessed=2 * B * N * C * io_dtype.itemsize + 8 * C * C + 8 * C)

    kernel = functools.partial(_gsp_kernel, fused=fused)

    return pl.pallas_call(
        kernel,
        out_shape=jax.ShapeDtypeStruct((B, N, C), io_dtype),
        grid_spec=pl.GridSpec(
            grid=grid,
            in_specs=[pl.BlockSpec((TB, N, C), lambda b: (b, 0, 0)),  # x slab
                      *weight_specs,                                  # qkv weights
                      _const_spec((1, C)),                            # temperature
                      _const_spec((C, C)),                            # Wproj^T
                      _const_spec((1, C))],                           # proj bias
            out_specs=pl.BlockSpec((TB, N, C), lambda b: (b, 0, 0)),
        ),
        compiler_params=pltpu.CompilerParams(
            dimension_semantics=("parallel",),
            vmem_limit_bytes=budget),
        cost_estimate=cost,
    )(x_io, *weight_args, temp_row, wp, bproj_row)


def _reference(x, w_qkv, temperature, w_proj, b_proj, num_heads):
    """Pure-JAX (f32) re-implementation of the PyTorch forward."""
    B, N, C = x.shape
    d = C // num_heads
    qkv = jnp.einsum('bnc,oc->bno', x, w_qkv)                       # [B, N, 3C]
    qkv = qkv.reshape(B, N, 3, num_heads, d).transpose(2, 0, 3, 1, 4)
    q, k, v = qkv[0], qkv[1], qkv[2]                                # [B, H, N, d]
    q = jnp.swapaxes(q, -2, -1)                                     # [B, H, d, N]
    k = jnp.swapaxes(k, -2, -1)
    v = jnp.swapaxes(v, -2, -1)
    q = q / jnp.maximum(jnp.linalg.norm(q, axis=-1, keepdims=True), 1e-12)
    k = k / jnp.maximum(jnp.linalg.norm(k, axis=-1, keepdims=True), 1e-12)
    attn = q * k * temperature[None, :, :, :]
    attn = jax.nn.softmax(attn, axis=-1)
    out = (attn * v).transpose(0, 3, 1, 2).reshape(B, N, C)
    return jnp.einsum('bnc,oc->bno', out, w_proj) + b_proj


if __name__ == "__main__":
    B, N, C, H = 2, 16, 32, 8
    key = jax.random.PRNGKey(0)
    kx, kq, kp, kb = jax.random.split(key, 4)

    x = jax.random.normal(kx, (B, N, C), dtype=jnp.float32)
    # synthetic parameters (shapes from nn.Linear / nn.Parameter, qkv_bias=False)
    w_qkv = 0.02 * jax.random.normal(kq, (3 * C, C), dtype=jnp.float32)  # qkv.weight
    w_proj = 0.02 * jax.random.normal(kp, (C, C), dtype=jnp.float32)     # proj.weight
    b_proj = 0.01 * jax.random.normal(kb, (C,), dtype=jnp.float32)       # proj.bias
    temperature = jnp.ones((H, 1, 1), dtype=jnp.float32)                 # temperature

    out = global_semantic_path_forward(x, w_qkv, temperature, w_proj, b_proj, H,
                                       io_dtype=jnp.bfloat16)
    out = jax.block_until_ready(out)
    assert out.shape == (B, N, C)

    # Reference on the exact (bf16-quantized) input the kernel consumed.
    x_q = x.astype(jnp.bfloat16).astype(jnp.float32)
    ref = _reference(x_q, w_qkv, temperature, w_proj, b_proj, H)
    assert jnp.allclose(out.astype(jnp.float32), ref, atol=2e-2, rtol=2e-2), \
        "mismatch vs reference"
    print("KERNEL_OK")
</pallas_src>

<mosaic_0001>
module attributes {stable_mosaic.version = 11 : i64} {
  func.func @_gsp_kernel(%arg0: i32, %arg1: memref<1x16x32xbf16, #tpu.memory_space<vmem>>, %arg2: memref<32x32xbf16, #tpu.memory_space<vmem>>, %arg3: memref<32x32xbf16, #tpu.memory_space<vmem>>, %arg4: memref<32x32xbf16, #tpu.memory_space<vmem>>, %arg5: memref<1x32xf32, #tpu.memory_space<vmem>>, %arg6: memref<32x32xbf16, #tpu.memory_space<vmem>>, %arg7: memref<1x32xf32, #tpu.memory_space<vmem>>, %arg8: memref<1x16x32xbf16, #tpu.memory_space<vmem>>) attributes {dimension_semantics = [#tpu.dimension_semantics<parallel>], iteration_bounds = array<i64: 2>, scalar_prefetch = 0 : i64, scratch_operands = 0 : i64, tpu.core_type = #tpu.core_type<tc>, window_params = [{transform_indices = @transform_0, window_bounds = array<i64: 1, 16, 32>}, {pipeline_mode = #tpu.pipeline_mode<synchronous>, transform_indices = @transform_1, window_bounds = array<i64: 32, 32>}, {pipeline_mode = #tpu.pipeline_mode<synchronous>, transform_indices = @transform_2, window_bounds = array<i64: 32, 32>}, {pipeline_mode = #tpu.pipeline_mode<synchronous>, transform_indices = @transform_3, window_bounds = array<i64: 32, 32>}, {pipeline_mode = #tpu.pipeline_mode<synchronous>, transform_indices = @transform_4, window_bounds = array<i64: 1, 32>}, {pipeline_mode = #tpu.pipeline_mode<synchronous>, transform_indices = @transform_5, window_bounds = array<i64: 32, 32>}, {pipeline_mode = #tpu.pipeline_mode<synchronous>, transform_indices = @transform_6, window_bounds = array<i64: 1, 32>}, {transform_indices = @transform_7, window_bounds = array<i64: 1, 16, 32>}]} {
    %c0 = arith.constant 0 : index
    %c0_0 = arith.constant 0 : index
    %c0_1 = arith.constant 0 : index
    %0 = vector.load %arg1[%c0, %c0_0, %c0_1] : memref<1x16x32xbf16, #tpu.memory_space<vmem>>, vector<1x16x32xbf16>
    %1 = vector.shape_cast %0 : vector<1x16x32xbf16> to vector<16x32xbf16>
    %c0_2 = arith.constant 0 : index
    %c0_3 = arith.constant 0 : index
    %2 = vector.load %arg2[%c0_2, %c0_3] : memref<32x32xbf16, #tpu.memory_space<vmem>>, vector<32x32xbf16>
    %cst = arith.constant dense<0.000000e+00> : vector<16x32xf32>
    %3 = tpu.matmul %1, %2, %cst {dimension_numbers = #tpu.dot_dimension_numbers<[1], [0], [0], [1], [0, 0, 1, 1], [], []>} : vector<16x32xbf16>, vector<32x32xbf16>, vector<16x32xf32> -> vector<16x32xf32>
    %c0_4 = arith.constant 0 : index
    %c0_5 = arith.constant 0 : index
    %4 = vector.load %arg3[%c0_4, %c0_5] : memref<32x32xbf16, #tpu.memory_space<vmem>>, vector<32x32xbf16>
    %cst_6 = arith.constant dense<0.000000e+00> : vector<16x32xf32>
    %5 = tpu.matmul %1, %4, %cst_6 {dimension_numbers = #tpu.dot_dimension_numbers<[1], [0], [0], [1], [0, 0, 1, 1], [], []>} : vector<16x32xbf16>, vector<32x32xbf16>, vector<16x32xf32> -> vector<16x32xf32>
    %c0_7 = arith.constant 0 : index
    %c0_8 = arith.constant 0 : index
    %6 = vector.load %arg4[%c0_7, %c0_8] : memref<32x32xbf16, #tpu.memory_space<vmem>>, vector<32x32xbf16>
    %cst_9 = arith.constant dense<0.000000e+00> : vector<16x32xf32>
    %7 = tpu.matmul %1, %6, %cst_9 {dimension_numbers = #tpu.dot_dimension_numbers<[1], [0], [0], [1], [0, 0, 1, 1], [], []>} : vector<16x32xbf16>, vector<32x32xbf16>, vector<16x32xf32> -> vector<16x32xf32>
    %8 = vector.shape_cast %3 : vector<16x32xf32> to vector<1x16x32xf32>
    %9 = vector.shape_cast %5 : vector<16x32xf32> to vector<1x16x32xf32>
    %10 = vector.shape_cast %7 : vector<16x32xf32> to vector<1x16x32xf32>
    %11 = arith.mulf %8, %8 : vector<1x16x32xf32>
    %cst_10 = arith.constant dense<0.000000e+00> : vector<1x32xf32>
    %12 = vector.multi_reduction <add>, %11, %cst_10 [1] : vector<1x16x32xf32> to vector<1x32xf32>
    %13 = vector.shape_cast %12 : vector<1x32xf32> to vector<1x1x32xf32>
    %cst_11 = arith.constant 1.000000e-24 : f32
    %14 = vector.broadcast %cst_11 : f32 to vector<1x1x32xf32>
    %15 = arith.maximumf %13, %14 : vector<1x1x32xf32>
    %16 = arith.mulf %9, %9 : vector<1x16x32xf32>
    %cst_12 = arith.constant dense<0.000000e+00> : vector<1x32xf32>
    %17 = vector.multi_reduction <add>, %16, %cst_12 [1] : vector<1x16x32xf32> to vector<1x32xf32>
    %18 = vector.shape_cast %17 : vector<1x32xf32> to vector<1x1x32xf32>
    %cst_13 = arith.constant 1.000000e-24 : f32
    %19 = vector.broadcast %cst_13 : f32 to vector<1x1x32xf32>
    %20 = arith.maximumf %18, %19 : vector<1x1x32xf32>
    %c0_14 = arith.constant 0 : index
    %c0_15 = arith.constant 0 : index
    %21 = vector.load %arg5[%c0_14, %c0_15] : memref<1x32xf32, #tpu.memory_space<vmem>>, vector<1x32xf32>
    %22 = vector.shape_cast %21 : vector<1x32xf32> to vector<1x1x32xf32>
    %23 = math.rsqrt %15 : vector<1x1x32xf32>
    %24 = arith.mulf %22, %23 : vector<1x1x32xf32>
    %25 = math.rsqrt %20 : vector<1x1x32xf32>
    %26 = arith.mulf %24, %25 : vector<1x1x32xf32>
    %27 = arith.mulf %8, %9 : vector<1x16x32xf32>
    %28 = vector.broadcast %26 : vector<1x1x32xf32> to vector<1x16x32xf32>
    %29 = arith.mulf %27, %28 : vector<1x16x32xf32>
    %30 = math.absf %22 : vector<1x1x32xf32>
    %31 = vector.broadcast %30 : vector<1x1x32xf32> to vector<1x16x32xf32>
    %32 = arith.subf %29, %31 : vector<1x16x32xf32>
    %33 = math.exp %32 : vector<1x16x32xf32>
    %cst_16 = arith.constant dense<0.000000e+00> : vector<1x32xf32>
    %34 = vector.multi_reduction <add>, %33, %cst_16 [1] : vector<1x16x32xf32> to vector<1x32xf32>
    %35 = vector.shape_cast %34 : vector<1x32xf32> to vector<1x1x32xf32>
    %36 = tpu.reciprocal %35 {approx = true} : vector<1x1x32xf32> -> vector<1x1x32xf32>
    %37 = vector.broadcast %36 : vector<1x1x32xf32> to vector<1x16x32xf32>
    %38 = arith.mulf %33, %37 : vector<1x16x32xf32>
    %39 = arith.mulf %38, %10 : vector<1x16x32xf32>
    %40 = arith.truncf %39 : vector<1x16x32xf32> to vector<1x16x32xbf16>
    %41 = vector.shape_cast %40 : vector<1x16x32xbf16> to vector<16x32xbf16>
    %c0_17 = arith.constant 0 : index
    %c0_18 = arith.constant 0 : index
    %42 = vector.load %arg6[%c0_17, %c0_18] : memref<32x32xbf16, #tpu.memory_space<vmem>>, vector<32x32xbf16>
    %cst_19 = arith.constant dense<0.000000e+00> : vector<16x32xf32>
    %43 = tpu.matmul %41, %42, %cst_19 {dimension_numbers = #tpu.dot_dimension_numbers<[1], [0], [0], [1], [0, 0, 1, 1], [], []>} : vector<16x32xbf16>, vector<32x32xbf16>, vector<16x32xf32> -> vector<16x32xf32>
    %c0_20 = arith.constant 0 : index
    %c0_21 = arith.constant 0 : index
    %44 = vector.load %arg7[%c0_20, %c0_21] : memref<1x32xf32, #tpu.memory_space<vmem>>, vector<1x32xf32>
    %45 = vector.broadcast %44 : vector<1x32xf32> to vector<16x32xf32>
    %46 = arith.addf %43, %45 : vector<16x32xf32>
    %47 = vector.shape_cast %46 : vector<16x32xf32> to vector<1x16x32xf32>
    %48 = arith.truncf %47 : vector<1x16x32xf32> to vector<1x16x32xbf16>
    %c0_22 = arith.constant 0 : index
    %c0_23 = arith.constant 0 : index
    %c0_24 = arith.constant 0 : index
    %49 = vector.load %arg8[%c0_22, %c0_23, %c0_24] : memref<1x16x32xbf16, #tpu.memory_space<vmem>>, vector<1x16x32xbf16>
    tpu.vector_store %arg8[%c0_22, %c0_23, %c0_24], %48 {strides = array<i32>} : memref<1x16x32xbf16, #tpu.memory_space<vmem>>, vector<1x16x32xbf16>,
    return
  }
  func.func @transform_0(%arg0: i32) -> (i32, i32, i32) {
    %c0_i32 = arith.constant 0 : i32
    %c0_i32_0 = arith.constant 0 : i32
    %c0_i32_1 = arith.constant 0 : i32
    return %arg0, %c0_i32, %c0_i32_0 : i32, i32, i32
  }
  func.func @transform_1(%arg0: i32) -> (i32, i32) {
    %c0_i32 = arith.constant 0 : i32
    %c0_i32_0 = arith.constant 0 : i32
    %c0_i32_1 = arith.constant 0 : i32
    return %c0_i32, %c0_i32_0 : i32, i32
  }
  func.func @transform_2(%arg0: i32) -> (i32, i32) {
    %c0_i32 = arith.constant 0 : i32
    %c0_i32_0 = arith.constant 0 : i32
    %c0_i32_1 = arith.constant 0 : i32
    return %c0_i32, %c0_i32_0 : i32, i32
  }
  func.func @transform_3(%arg0: i32) -> (i32, i32) {
    %c0_i32 = arith.constant 0 : i32
    %c0_i32_0 = arith.constant 0 : i32
    %c0_i32_1 = arith.constant 0 : i32
    return %c0_i32, %c0_i32_0 : i32, i32
  }
  func.func @transform_4(%arg0: i32) -> (i32, i32) {
    %c0_i32 = arith.constant 0 : i32
    %c0_i32_0 = arith.constant 0 : i32
    %c0_i32_1 = arith.constant 0 : i32
    return %c0_i32, %c0_i32_0 : i32, i32
  }
  func.func @transform_5(%arg0: i32) -> (i32, i32) {
    %c0_i32 = arith.constant 0 : i32
    %c0_i32_0 = arith.constant 0 : i32
    %c0_i32_1 = arith.constant 0 : i32
    return %c0_i32, %c0_i32_0 : i32, i32
  }
  func.func @transform_6(%arg0: i32) -> (i32, i32) {
    %c0_i32 = arith.constant 0 : i32
    %c0_i32_0 = arith.constant 0 : i32
    %c0_i32_1 = arith.constant 0 : i32
    return %c0_i32, %c0_i32_0 : i32, i32
  }
  func.func @transform_7(%arg0: i32) -> (i32, i32, i32) {
    %c0_i32 = arith.constant 0 : i32
    %c0_i32_0 = arith.constant 0 : i32
    %c0_i32_1 = arith.constant 0 : i32
    return %arg0, %c0_i32, %c0_i32_0 : i32, i32, i32
  }
}

</mosaic_0001>

<bundles_post_ra>
// kernel: tpu_custom_call.1
= control target key start
LH: loop header
LB: loop body
LE: loop exit
PB: predicated region body
PF: predicated region fallthrough
CT: control target
= control target key end

     0   :  { %s1511_s0 = inlined_call_operand.hbm [shape: bf16[2,16,32], index: 0, kind: input, shape index: {}]   ;;  %s1512_s1 = inlined_call_operand.hbm [shape: bf16[32,32], index: 1, kind: input, shape index: {}]   ;;  %s1513_s2 = inlined_call_operand.hbm [shape: bf16[32,32], index: 2, kind: input, shape index: {}]   ;;  %s1514_s3 = inlined_call_operand.hbm [shape: bf16[32,32], index: 3, kind: input, shape index: {}]   ;;  %s1515_s4 = inlined_call_operand.vmem [shape: f32[1,32], index: 4, kind: input, shape index: {}]   ;;  %s1516_s5 = inlined_call_operand.hbm [shape: bf16[32,32], index: 5, kind: input, shape index: {}]   ;;  %s1517_s6 = inlined_call_operand.vmem [shape: f32[1,32], index: 6, kind: input, shape index: {}]   ;;  %s1518_s7 = inlined_call_operand.hbm [shape: bf16[2,16,32], index: 7, kind: output, shape index: {}]  }
   0x1   :  { %1525 = sst [smem:[#allocation16_spill]] %s1512_s1 }
   0x2   :  { %12 = vsyncpa [#allocation3], 0 }
   0x3   :  { %14 = vsyncpa [#allocation3 + $0x1], 0 }
   0x4   :  { %15 = vsyncpa [#allocation6], 0 }
   0x5   :  { %16 = vsyncpa [#allocation9], 0 }
   0x6   :  { %17 = vsyncpa [#allocation4], 0 }
   0x7   :  { %19 = vsyncpa [#allocation4 + $0x1], 0  ;;  %s1264_s24 = smov 0   ;;  %s1266_s25 = smov 0  }
   0x8   :  { %s1268_s26 = smov 0   ;;  %s1270_s27 = smov 0  }
   0x9 LB: > { %s1285_s28 = sadd.s32 4294967295, %s1210_s27   ;;  %s808_s29 = sadd.s32 4294967294, %s1210_s27   ;;  %s1210_s27 = sphi %s1270_s27, %s1547_s27   ;;  %s1206_s26 = sphi %s1268_s26, %s1546_s26   ;;  %s1202_s25 = sphi %s1266_s25, %s1545_s25   ;;  %s1198_s24 = sphi %s1264_s24, %s1544_s24  }
   0xa   : > { %p45_p0 = scmp.ne.s32.totalorder %s1202_s25, %s1198_s24  ;;  %p1519_p1 = scmp.eq.s32.totalorder %s1285_s28, 0 }
   0xb   : > { %p195_p2 = scmp.eq.s32.totalorder %s1285_s28, 1  ;;  %p201_p3 = scmp.eq.s32.totalorder %s808_s29, 1 }
   0xc   : > { %p1294_p4 = por %p1519_p1, %p45_p0  ;;  %p809_p5 = scmp.ge.s32.totalorder %s1210_s27, 1 }
   0xd   : > { %p1299_p6 = por %p201_p3, %p45_p0  ;;  %p208_p7 = scmp.lt.s32.totalorder %s1210_s27, 3 }
   0xe   : > { %s1526_s30 = scalar_select %p1294_p4, 1, 0 }
   0xf   : > { %s1527_s8 = scalar_select %p1299_p6, 1, 0 }
  0x10   : > { %p1304_p8 = pnand %p809_p5, %p208_p7  ;;  %s1212_s10 = smov [#allocation5]  }
  0x11   : > { %s220_s11 = sshll.u32 %s1212_s10, 4  ;;  %s1213_s13 = smov [#allocation8]   ;;  %s221_s11 = int_to_ptr.vmem [resolvable:$true] %s220_s11 }
  0x12   : > { %s1528_s9 = scalar_select %p1304_p8, 1, 0 }
  0x13   : > { %p914_p9 = pneg %p1304_p8  ;;  %s246_s14 = sshll.u32 %s1213_s13, 4  ;;  %s247_s14 = int_to_ptr.vmem [resolvable:$true] %s246_s14 }
  0x14   : > { %s1214_s15 = smov [#allocation7]   ;;  %s1017_s17 = scalar_lea.vmem %s221_s11, 256 }
  0x15   : > { %p1313_p11 = pnand %p914_p9, %p1519_p1  ;;  %s233_s16 = sshll.u32 %s1214_s15, 4  ;;  %s234_s16 = int_to_ptr.vmem [resolvable:$true] %s233_s16 }
  0x16   : > { %p1018_p13 = scmp.ne.s32.totalorder %s221_s11, %s1017_s17  ;;  %p1025_p5 = scmp.lt.s32.totalorder %s221_s11, %s221_s11 }
  0x17   : > { %p1008_p12 = pneg %p1313_p11  ;;  %p1026_p7 = scmp.lt.s32.totalorder %s1017_s17, %s1017_s17 }
  0x19   : > { %p1020_p0 = pnand %p1018_p13, %p1008_p12  ;;  %p1027_p9 = por %p1026_p7, %p1025_p5 }
  0x1b   : > { %p1021_p3 = pneg %p1020_p0 }
  0x1d   : > { %p1028_p10 = pnand %p1027_p9, %p1021_p3 }
  0x1f   : > { %1031 = shalt.err (!%p1028_p10)
}
  0x20   : > { %s1520_s18 = smov 64   ;;  %s1521_s19 = smov 4  }
  0x21   : > { %s1530_s1 = sld [smem:[#allocation16_spill]]  ;;  %s1043_s22 = scalar_lea.vmem %s247_s14, 256 }
  0x22   : > { %p1044_p13 = scmp.ne.s32.totalorder %s247_s14, %s1043_s22  ;;  %p1051_p3 = scmp.lt.s32.totalorder %s247_s14, %s247_s14 }
  0x23   : > { %p1052_p10 = scmp.lt.s32.totalorder %s1043_s22, %s1043_s22 }
  0x24   : > { %p1046_p0 = pnand %p1044_p13, %p1008_p12 }
  0x25   : > { %p1053_p7 = por %p1052_p10, %p1051_p3 }
  0x26   : > { %p1047_p5 = pneg %p1046_p0 }
  0x27   : > { %917 = dma.hbm_to_vmem [thread:$0]  (!%p1313_p11), %s1530_s1, 256, %s221_s11, [#allocation6], %s1520_s18, %s1520_s18, %s1521_s19  }
  0x28   : > { %p1054_p9 = pnand %p1053_p7, %p1047_p5 }
  0x2a   : > { %1057 = shalt.err (!%p1054_p9)
}
  0x2b   : > { %923 = dma.hbm_to_vmem [thread:$0]  (!%p1313_p11), %s1514_s3, 256, %s247_s14, [#allocation9], %s1520_s18, %s1520_s18, %s1521_s19  }
  0x2c   : > { %s1069_s10 = scalar_lea.vmem %s234_s16, 256  ;;  %p1077_p3 = scmp.lt.s32.totalorder %s234_s16, %s234_s16 }
  0x2d   : > { %p1070_p1 = scmp.ne.s32.totalorder %s234_s16, %s1069_s10  ;;  %p1078_p5 = scmp.lt.s32.totalorder %s1069_s10, %s1069_s10 }
  0x2f   : > { %p1072_p13 = pnand %p1070_p1, %p1008_p12  ;;  %p1079_p10 = por %p1078_p5, %p1077_p3 }
  0x31   : > { %p1073_p0 = pneg %p1072_p13 }
  0x33   : > { %p1080_p7 = pnand %p1079_p10, %p1073_p0 }
  0x35   : > { %1083 = shalt.err (!%p1080_p7)
}
  0x36   : > { %920 = dma.hbm_to_vmem [thread:$0]  (!%p1313_p11), %s1513_s2, 256, %s234_s16, [#allocation6], %s1520_s18, %s1520_s18, %s1521_s19  }
  0x37   : > { %s1217_s14 = smov [#allocation10]  }
  0x38   : > { %s262_s15 = sshll.u32 %s1217_s14, 4  ;;  %s263_s15 = int_to_ptr.vmem [resolvable:$true] %s262_s15 }
  0x39   : > { %s1095_s17 = scalar_lea.vmem %s263_s15, 256  ;;  %p1103_p0 = scmp.lt.s32.totalorder %s263_s15, %s263_s15 }
  0x3a   : > { %p1096_p1 = scmp.ne.s32.totalorder %s263_s15, %s1095_s17  ;;  %p1104_p3 = scmp.lt.s32.totalorder %s1095_s17, %s1095_s17 }
  0x3c   : > { %p1098_p9 = pnand %p1096_p1, %p1008_p12  ;;  %p1105_p5 = por %p1104_p3, %p1103_p0 }
  0x3e   : > { %p1099_p13 = pneg %p1098_p9 }
  0x40   : > { %p1106_p10 = pnand %p1105_p5, %p1099_p13 }
  0x42   : > { %1109 = shalt.err (!%p1106_p10)
}
  0x43   : > { %926 = dma.hbm_to_vmem [thread:$0]  (!%p1313_p11), %s1516_s5, 256, %s263_s15, [#allocation9], %s1520_s18, %s1520_s18, %s1521_s19  }
  0x44   : > { %s1364_s21 = sadd.s32 1, %s1210_s27   ;;  %s32_s12 = sadd.s32 1, %s1206_s26 }
  0x45   : > { %s29_s22 = ssub.s32 %s1210_s27, %s1364_s21  ;;  %p39_p12 = scmp.ne.s32.totalorder %s1206_s26, %s1202_s25 }
  0x46   : > { %p30_p7 = scmp.eq.s32.totalorder %s29_s22, 0  ;;  %p40_p1 = scmp.eq.s32.totalorder %s1210_s27, 0 }
  0x47   : > { %p1374_p9 = por %p195_p2, %p39_p12  ;;  %p939_p13 = scmp.lt.s32.totalorder %s1210_s27, 2 }
  0x48   : > { %s1380_s29 = scalar_select %p30_p7, %s1206_s26, %s32_s12  }
  0x49   : > { %s1531_s23 = scalar_select %p1374_p9, 1, 0 }
  0x4a   : > { %p41_p0 = por %p40_p1, %p39_p12  ;;  %s279_s10 = sand.u32 1, %s1206_s26  }
  0x4b   : > { %s815_s11 = sshll.u32 %s279_s10, 3  ;;  %s846_s13 = sshll.u32 %s1210_s27, 7 }
  0x4c   : > { %s1387_s17 = scalar_lea.hbm %s1511_s0, %s846_s13  ;;  %s283_s16 = scalar_lea.vmem [#allocation2], %s815_s11 }
  0x4d   : > { %s290_s20 = sshll.u32 %s283_s16, 4  ;;  %p1391_p2 = pnand %p939_p13, %p41_p0  ;;  %s1389_s20 = int_to_ptr.vmem [resolvable:$true] %s290_s20 }
  0x4e   : > { %s1395_s12 = scalar_lea.sflag [#allocation3], %s279_s10  ;;  %s1110_s18 = scalar_lea.hbm %s1387_s17, 128 }
  0x4f   : > { %p1111_p11 = scmp.ne.s32.totalorder %s1387_s17, %s1110_s18  ;;  %p1112_p3 = pneg %p1391_p2 }
  0x50   : > { %s1115_s11 = scalar_lea.hbm %s1511_s0, 256  ;;  %p1116_p12 = scmp.lt.s32.totalorder %s1387_s17, %s1511_s0 }
  0x51   : > { %p1113_p5 = pnand %p1112_p3, %p1111_p11  ;;  %p1117_p7 = scmp.lt.s32.totalorder %s1115_s11, %s1110_s18 }
  0x53   : > { %p1114_p10 = pneg %p1113_p5  ;;  %p1118_p1 = por %p1117_p7, %p1116_p12 }
  0x55   : > { %p1119_p13 = pnand %p1118_p1, %p1114_p10 }
  0x57   : > { %1122 = shalt.err (!%p1119_p13)
}
  0x58   : > { %s1123_s10 = scalar_lea.vmem %s1389_s20, 128  ;;  %s1218_s19 = smov [#allocation2]  }
  0x59   : > { %p1124_p0 = scmp.ne.s32.totalorder %s1389_s20, %s1123_s10  ;;  %s1128_s1 = sshll.u32 %s1218_s19, 4  ;;  %s1129_s1 = int_to_ptr.vmem [resolvable:$false] %s1128_s1 }
  0x5a   : > { %s1130_s13 = scalar_lea.vmem %s1129_s1, 256  ;;  %p1131_p5 = scmp.lt.s32.totalorder %s1389_s20, %s1129_s1 }
  0x5b   : > { %p1126_p6 = pnand %p1124_p0, %p1112_p3  ;;  %p1132_p9 = scmp.lt.s32.totalorder %s1130_s13, %s1123_s10 }
  0x5d   : > { %p1127_p11 = pneg %p1126_p6  ;;  %p1133_p4 = por %p1132_p9, %p1131_p5 }
  0x5f   : > { %p1134_p8 = pnand %p1133_p4, %p1127_p11 }
  0x61   : > { %1137 = shalt.err (!%p1134_p8)
}
  0x62   : > { %s1533_s18 = smov 4   ;;  %s1534_s14 = smov 64  }
  0x63   : > { %930 = dma.hbm_to_vmem [thread:$0]  (!%p1391_p2), %s1387_s17, 128, %s1389_s20, %s1395_s12, %s1534_s14, %s1534_s14, %s1533_s18  }
  0x64   : > { %p1535_p6 = scmp.ne.s32.totalorder %s1528_s9, 0 }
  0x65   : > { %s1422_s19 = sand.u32 (!%p1535_p6), 1, %s1202_s25   ;;  %p1536_p4 = scmp.ne.s32.totalorder (!%p1535_p6), %s1526_s30, 0 }
  0x66   : > { %302 = sbr.rel (%p1535_p6) target bundleno = 631 (0x277), region = 48  ;;  %s819_s1 = sshll.u32 (!%p1535_p6), %s1422_s19, 3 }
  0x67   : > { %s305_s11 = scalar_lea.sflag (!%p1535_p6), [#allocation3], %s1422_s19  ;;  %s308_s22 = scalar_lea.vmem (!%p1535_p6), [#allocation2], %s819_s1 }
  0x6b   : > { %1181 = dma.done.wait (%p1536_p4), %s305_s11, 128  }
  0x6c   : > { %1183 = vsyncadd (%p1536_p4), %s305_s11, 4294967168  ;;  %p1537_p8 = scmp.eq.s32.totalorder %s1285_s28, 0 }
  0x6e   : > { %1185 = dma.done.wait (%p1537_p8), [#allocation6], 512   ;;  %p1538_p9 = pmov %p1537_p8 }
  0x6f   : > { %p1539_p2 = pmov %p1537_p8 }
  0x70   : > { %1187 = vsyncadd (%p1538_p9), [#allocation6], 4294966784 }
  0x71   : > { %1189 = dma.done.wait (%p1539_p2), [#allocation9], 512   ;;  %p1540_p3 = pmov %p1539_p2 }
  0x72   : > { %v1219_v0 = vmov 0.0   ;;  %vm1220_vm0 = vmmov 0   ;;  %v987_v1 = vld [vmem:[#allocation5 + $0x8] sm:$0xff]   ;;  %v988_v2 = vld [vmem:[#allocation7 + $0x8] sm:$0xff]   ;;  %v989_v3 = vld [vmem:[#allocation5] sm:$0xff]   ;;  %vm379_vm1 = vcmask 261120   ;;  %v570_v46 = vlaneseq }
  0x73   : > { %1191 = vsyncadd (%p1540_p3), [#allocation9], 4294966784  ;;  %862 = vmatprep.subr.bf16.mxu0 %v1219_v0  ;;  %870 = vmatprep.subr.bf16.mxu1 %v1219_v0  ;;  %v990_v4 = vld [vmem:[#allocation7] sm:$0xff]   ;;  %v992_v6 = vld [vmem:[#allocation8 + $0x8] sm:$0xff]   ;;  %vm680_vm2 = vcmask 257024   ;;  %s354_s12 = scalar_lea.vmem [#allocation11], %s819_s1 }
  0x74   : > { %866 = vmatprep.mubr.msk.bf16.mxu0 %vm1220_vm0, %v1219_v0  ;;  %874 = vmatprep.mubr.msk.bf16.mxu1 %vm1220_vm0, %v1219_v0  ;;  %v991_v5 = vld [vmem:[%s308_s22] sm:$0xff]   ;;  %v993_v7 = vld [vmem:[#allocation8] sm:$0xff]   ;;  %v571_v47 = vshrl.u32 %v570_v46, 7  ;;  %s697_s15 = sshll.u32 %s354_s12, 4  ;;  %s849_s16 = sshll.u32 %s1285_s28, 7  ;;  %s1468_s15 = int_to_ptr.vmem [resolvable:$true] %s697_s15 }
  0x75   : > { %863 = vmatpush3.bf16.msra.mxu0 %v987_v1  ;;  %871 = vmatpush3.bf16.msra.mxu1 %v988_v2  ;;  %v994_v8 = vld [vmem:[#allocation10 + $0x8] sm:$0xff]   ;;  %v995_v9 = vld [vmem:[#allocation10] sm:$0xff]   ;;  %s1466_s18 = scalar_lea.hbm %s1518_s7, %s849_s16  ;;  %s684_s14 = scalar_lea.sflag [#allocation4], %s1422_s19 }
  0x76   : > { %864 = vmatprep.subr.bf16.mxu0 %v1219_v0  ;;  %872 = vmatprep.subr.bf16.mxu1 %v1219_v0  ;;  %v562_v48 = vld [vmem:[%s1515_s4] sm:$0x1]  ;;  %v572_v51 = vsub.s32 0, %v571_v47  ;;  %s1138_s1 = scalar_lea.vmem %s1468_s15, 128  ;;  %p1541_p12 = scmp.ne.s32.totalorder %s1531_s23, 0 }
  0x77   : > { %v577_v52 = vand.u32 2147483647, %v562_v48  ;;  %p1139_p10 = scmp.ne.s32.totalorder %s1468_s15, %s1138_s1  ;;  %s1221_s28 = smov [#allocation11]  }
  0x78   : > { %s1142_s11 = sshll.u32 %s1221_s28, 4  ;;  %s1143_s11 = int_to_ptr.vmem [resolvable:$false] %s1142_s11 }
  0x79   : > { %865 = vmatpush3.bf16.msra.mxu0 %v989_v3  ;;  %873 = vmatpush3.bf16.msra.mxu1 %v990_v4  ;;  %v582_v58 = vrot.slane %v577_v52, %v572_v51  ;;  %p1140_p7 = pnand %p1139_p10, %p1541_p12  ;;  %s1144_s22 = scalar_lea.vmem %s1143_s11, 256 }
  0x7a   : > { %878 = vmatprep.subr.bf16.mxu0 %v1219_v0  ;;  %886 = vmatprep.subr.bf16.mxu1 %v1219_v0  ;;  %p1145_p13 = scmp.lt.s32.totalorder %s1468_s15, %s1143_s11  ;;  %p1146_p0 = scmp.lt.s32.totalorder %s1144_s22, %s1138_s1 }
  0x7b   : > { %p1141_p1 = pneg %p1140_p7 }
  0x7c   : > { %867 = vmatmul.mubr.msk.bf16.vlgmr.msra.gmra.mxu0 %vm379_vm1, %v991_v5  ;;  %875 = vmatmul.mubr.msk.bf16.vlgmr.msra.gmra.mxu1 %vm379_vm1, %v991_v5  ;;  %p1147_p11 = por %p1146_p0, %p1145_p13 }
  0x7d   : > { %879 = vmatpush3.bf16.msra.mxu0 %v992_v6  ;;  %882 = vmatprep.mubr.msk.bf16.mxu0 %vm1220_vm0, %v1219_v0 }
  0x7e   : > { %880 = vmatprep.subr.bf16.mxu0 %v1219_v0  ;;  %890 = vmatprep.mubr.msk.bf16.mxu1 %vm1220_vm0, %v1219_v0  ;;  %p1148_p5 = pnand %p1147_p11, %p1141_p1 }
  0x7f   : > { %887 = vmatpush3.bf16.msra.mxu1 %v994_v8 }
  0x80   : > { %888 = vmatprep.subr.bf16.mxu1 %v1219_v0 }
  0x81   : > { %881 = vmatpush3.bf16.msra.mxu0 %v993_v7 }
  0x83   : > { %889 = vmatpush3.bf16.msra.mxu1 %v995_v9 }
  0x84   : > { %883 = vmatmul.mubr.msk.bf16.vlgmr.msra.gmra.mxu0 %vm379_vm1, %v991_v5 }
 0x13c   : > { %v417_v10 = vpop.f32.mrf.mxu0  ;;  %v474_v11 = vpop.f32.mrf.mxu1 }
 0x13d   : > { %v538_v13 = vmul.f32 %v417_v10, %v417_v10  ;;  %v550_v15 = vmul.f32 %v474_v11, %v474_v11  ;;  %v567_v55 = vmul.f32 %v474_v11, %v417_v10 }
 0x13e   : > { %v868_v12 = vpop.f32.mrf.mxu0  ;;  %v876_v14 = vpop.f32.mrf.mxu1 }
 0x13f   : > { %v540_v21 = vsel %vm379_vm1, %v538_v13, 0.0  ;;  %v552_v24 = vsel %vm379_vm1, %v550_v15, 0.0 }
 0x140   : > { %v420_v16 = vpop.f32.mrf.mxu0  ;;  %v477_v18 = vpop.f32.mrf.mxu1 }
 0x141   : > { %v539_v17 = vmul.f32 %v420_v16, %v420_v16  ;;  %v551_v19 = vmul.f32 %v477_v18, %v477_v18  ;;  %v568_v56 = vmul.f32 %v477_v18, %v420_v16  ;;  %v835_v18 = vld [vmem:[%s1517_s6] ss:$0 sm:$0xff] }
 0x142   : > { %v869_v20 = vpop.f32.mrf.mxu0  ;;  %v877_v23 = vpop.f32.mrf.mxu1 }
 0x143   : > { %v541_v22 = vsel %vm379_vm1, %v539_v17, 0.0  ;;  %v553_v26 = vsel %vm379_vm1, %v551_v19, 0.0 }
 0x144   : > { %v542_v25 = vadd.f32 %v541_v22, %v540_v21  ;;  %v531_v27 = vpop.f32.mrf.mxu0  ;;  %v554_v28 = vadd.f32 %v553_v26, %v552_v24 }
 0x146   : > { %v543_v29 = vrot.slane %v542_v25, 4  ;;  %v884_v30 = vpop.f32.mrf.mxu0  ;;  %v555_v31 = vrot.slane %v554_v28, 4 }
 0x148   : > { %v544_v32 = vadd.f32 %v543_v29, %v542_v25  ;;  %v534_v33 = vpop.f32.mrf.mxu0  ;;  %v556_v34 = vadd.f32 %v555_v31, %v554_v28 }
 0x14a   : > { %v545_v35 = vrot.slane %v544_v32, 2  ;;  %v885_v36 = vpop.f32.mrf.mxu0  ;;  %v557_v37 = vrot.slane %v556_v34, 2 }
 0x14c   : > { %v546_v38 = vadd.f32 %v545_v35, %v544_v32  ;;  %v558_v39 = vadd.f32 %v557_v37, %v556_v34 }
 0x14e   : > { %v547_v40 = vrot.slane %v546_v38, 1  ;;  %v559_v41 = vrot.slane %v558_v39, 1 }
 0x150   : > { %v548_v42 = vadd.f32 %v547_v40, %v546_v38  ;;  %v560_v43 = vadd.f32 %v559_v41, %v558_v39 }
 0x152   : > { %v549_v44 = vmax.f32 %v548_v42, 1e-24  ;;  %v561_v45 = vmax.f32 %v560_v43, 1e-24 }
 0x154   : > { %996 = vrsqrt.f32 %v549_v44 }
 0x155   : > { %998 = vrsqrt.f32 %v561_v45 }
 0x161   : > { %v997_v49 = vpop.eup %996 }
 0x162   : > { %v564_v50 = vmul.f32 %v997_v49, %v562_v48  ;;  %v999_v53 = vpop.eup %998 }
 0x164   : > { %v566_v54 = vmul.f32 %v999_v53, %v564_v50 }
 0x166   : > { %v573_v57 = vrot.slane %v566_v54, %v572_v51 }
 0x168   : > { %v575_v59 = vmul.f32 %v573_v57, %v567_v55  ;;  %v576_v60 = vmul.f32 %v573_v57, %v568_v56 }
 0x16a   : > { %v584_v61 = vsub.f32 %v575_v59, %v582_v58  ;;  %v585_v62 = vsub.f32 %v576_v60, %v582_v58 }
 0x16c   : > { %v586_v63 = vmul.f32 1.442695, %v584_v61  ;;  %v588_v0 = vmul.f32 1.442695, %v585_v62 }
 0x16e   : > { %1000 = vpow2.f32 %v586_v63 }
 0x16f   : > { %1002 = vpow2.f32 %v588_v0 }
 0x17b   : > { %v1001_v1 = vpop.eup %1000 }
 0x17c   : > { %v1003_v2 = vpop.eup %1002  ;;  %v590_v3 = vsel %vm379_vm1, %v1001_v1, 0.0 }
 0x17d   : > { %v591_v4 = vsel %vm379_vm1, %v1003_v2, 0.0 }
 0x17e   : > { %v592_v5 = vadd.f32 %v591_v4, %v590_v3 }
 0x180   : > { %v593_v6 = vrot.slane %v592_v5, 4 }
 0x182   : > { %v594_v7 = vadd.f32 %v593_v6, %v592_v5 }
 0x184   : > { %v595_v8 = vrot.slane %v594_v7, 2 }
 0x186   : > { %v596_v9 = vadd.f32 %v595_v8, %v594_v7 }
 0x188   : > { %v597_v10 = vrot.slane %v596_v9, 1 }
 0x18a   : > { %v598_v11 = vadd.f32 %v597_v10, %v596_v9 }
 0x18c   : > { %1004 = vrcp.f32 %v598_v11 }
 0x199   : > { %v1005_v12 = vpop.eup %1004 }
 0x19a   : > { %v600_v13 = vmul.f32 %v1005_v12, %v1001_v1  ;;  %v601_v14 = vmul.f32 %v1005_v12, %v1003_v2 }
 0x19c   : > { %v602_v15 = vmul.f32 %v600_v13, %v531_v27  ;;  %v603_v16 = vmul.f32 %v601_v14, %v534_v33 }
 0x19e   : > { %v604_v17 = vpack.c.bf16 %v603_v16, %v602_v15 }
 0x1a0   : > { %891 = vmatmul.mubr.msk.bf16.vlgmr.msra.gmra.mxu1 %vm379_vm1, %v604_v17 }
 0x260   : > { %v665_v19 = vpop.f32.mrf.mxu1 }
 0x261   : > { %v666_v20 = vadd.f32 %v835_v18, %v665_v19 }
 0x262   : > { %v892_v21 = vpop.f32.mrf.mxu1 }
 0x263   : > { %v847_v22 = vpack.c.bf16 %v666_v20, %v666_v20 }
 0x264   : > { %v668_v23 = vpop.f32.mrf.mxu1 }
 0x265   : > { %681 = vst.msk [vmem:[%s354_s12] sm:$0xf] %vm680_vm2, %v847_v22  ;;  %v669_v24 = vadd.f32 %v835_v18, %v668_v23 }
 0x266   : > { %v893_v25 = vpop.f32.mrf.mxu1 }
 0x267   : > { %v848_v26 = vpack.c.bf16 %v669_v24, %v669_v24 }
 0x269   : > { %682 = vst.msk [vmem:[%s354_s12 + $0x4] sm:$0xf] %vm680_vm2, %v848_v26 }
 0x26a   : > { %1151 = shalt.err (!%p1148_p5)
}
 0x26b   : > { %s1152_s30 = scalar_lea.hbm %s1466_s18, 128  ;;  %s1156_s20 = scalar_lea.hbm %s1518_s7, 256 }
 0x26c   : > { %p1153_p6 = scmp.ne.s32.totalorder %s1466_s18, %s1152_s30  ;;  %p1157_p9 = scmp.lt.s32.totalorder %s1466_s18, %s1518_s7 }
 0x26d   : > { %p1158_p2 = scmp.lt.s32.totalorder %s1156_s20, %s1152_s30 }
 0x26e   : > { %p1154_p4 = pnand %p1153_p6, %p1541_p12 }
 0x26f   : > { %p1159_p3 = por %p1158_p2, %p1157_p9 }
 0x270   : > { %p1155_p8 = pneg %p1154_p4 }
 0x272   : > { %p1160_p10 = pnand %p1159_p3, %p1155_p8 }
 0x274   : > { %1163 = shalt.err (!%p1160_p10)
}
 0x275   : > { %s1222_s10 = smov 64   ;;  %s1223_s13 = smov 4  }
 0x276   : > { %912 = dma.vmem_to_hbm [thread:$0]  (%p1541_p12), %s1468_s15, 128, %s1466_s18, %s684_s14, %s1222_s10, %s1222_s10, %s1223_s13  }
 0x277 PF: > { %s712_s1 = sand.u32 1, %s1198_s24   ;;  %p1542_p7 = scmp.ne.s32.totalorder %s1527_s8, 0 }
 0x278   : > { %p1543_p1 = scmp.ge.s32.totalorder %s1210_s27, 2  ;;  %s713_s28 = scalar_lea.sflag [#allocation4], %s712_s1 }
 0x27a   : > { %p932_p13 = pnand %p1543_p1, %p1542_p7 }
 0x27c   : > { %p933_p0 = pneg %p932_p13 }
 0x27e   : > { %1193 = dma.done.wait (%p933_p0), %s713_s28, 128  }
 0x27f   : > { %1195 = vsyncadd (%p933_p0), %s713_s28, 4294967168  ;;  %p22_p11 = scmp.ge.s32.totalorder %s1364_s21, 4   ;;  %s1544_s24 = smov %s1202_s25 }
 0x280   : > { %s1545_s25 = smov %s1206_s26  ;;  %s1546_s26 = smov %s1380_s29 }
 0x281   : > { %s1547_s27 = smov %s1364_s21  ;;  %24 = sbr.rel (!%p22_p11) target bundleno = 9 (0x9), region = 109 }
 0x286   :  { %718 = vsyncpa [#allocation3], 1 }
 0x287   :  { %720 = vsyncpa [#allocation3 + $0x1], 1 }
 0x288   :  { %721 = vsyncpa [#allocation6], 1 }
 0x289   :  { %722 = vsyncpa [#allocation9], 1 }
 0x28a   :  { %723 = vsyncpa [#allocation4], 1 }
 0x28b   :  { %725 = vsyncpa [#allocation4 + $0x1], 1 }

</bundles_post_ra>
